<compile_context>
chip_gen: v7x
topology: tpu7x:2x2x1
jax: 0.10.0
libtpu: 0.0.40
codegen_flags: <defaults>
</compile_context>

<pallas_src>
import functools
import math

import jax
import jax.numpy as jnp
from jax.experimental import pallas as pl
from jax.experimental.pallas import tpu as pltpu

_LOG_EPS = math.log(1e-10)  # log of the clamp floor used by the PyTorch layer


# ----------------------------------------------------------------------------
# Kernel
# ----------------------------------------------------------------------------
def _select_logp(data_ref, logp_ref, max_cats, shape):
    """out[n, b] = logp[n, data[n, b]] via a static one-hot select over the
    (small) category axis.  Pure cmp/select on the VPU; invalid categories
    (>= max_cats) fall through to log(1e-10)."""
    dv = data_ref[...].astype(jnp.int32)                       # [tile, bn]
    lp = logp_ref[...]                                         # [tile, C]
    acc = jnp.full(shape, _LOG_EPS, dtype=jnp.float32)
    # TODO(synk): for large max_cats (>= ~32, e.g. 256-cat pixel data) switch
    # to a per-variable-group one-hot MXU matmul (out = logp @ onehot) or a
    # bit-indexed tree select; the linear chain costs ~2 VPU ops per category.
    for c in range(max_cats):                                  # static unroll
        acc = jnp.where(dv == c, lp[:, c:c + 1], acc)          # lane-broadcast
    return acc


def _cat_fwd_kernel(data_ref, logp_ref, mars_hbm_ref, out_ref, *scratch,
                    max_cats, tile, bn, b0, front, num_valid, n_row,
                    tot_rows, merge_first, merge_last):
    i = pl.program_id(0)          # node-row block within the layer window
    j = pl.program_id(1)          # batch (lane) block

    acc = _select_logp(data_ref, logp_ref, max_cats, (tile, bn))
    acc = acc.astype(out_ref.dtype)

    if not (merge_first or merge_last):
        # Tile-aligned layer window: every row belongs to this layer, every
        # block is written blindly and node_mars is never read.
        del mars_hbm_ref
        out_ref[...] = acc
        return

    mars_buf, sem = scratch

    conds = []
    if merge_first:
        conds.append(i == 0)
    if merge_last:
        conds.append(i == n_row - 1)
    is_boundary = conds[0] if len(conds) == 1 else jnp.logical_or(*conds)

    @pl.when(jnp.logical_not(is_boundary))
    def _():
        # Interior blocks: blind write, no node_mars read at all.
        out_ref[...] = acc

    col0 = pl.multiple_of(j * bn, bn)
    local_row = jax.lax.broadcasted_iota(jnp.int32, (tile, 1), 0)

    def _merge(blk, nrows):
        # Pull only this boundary block's existing node_mars rows (clamped to
        # the end of node_mars) and keep them for rows outside [sid, eid).
        row0 = (b0 + blk) * tile
        cp = pltpu.make_async_copy(
            mars_hbm_ref.at[pl.ds(row0, nrows), pl.ds(col0, bn)],
            mars_buf.at[pl.ds(0, nrows), :],
            sem)
        cp.start()
        cp.wait()
        win_row = blk * tile + local_row                        # (tile, 1)
        valid = (win_row >= front) & (win_row < front + num_valid)
        # Rows beyond `nrows` hold stale scratch data, but those rows are past
        # the end of node_mars and their writeback is dropped by Pallas.
        out_ref[...] = jnp.where(valid, acc, mars_buf[...])

    if merge_first:
        k_first = min(tile, tot_rows - b0 * tile)

        @pl.when(i == 0)
        def _():
            _merge(0, k_first)

    if merge_last and not (merge_first and n_row == 1):
        k_last = min(tile, tot_rows - (b0 + n_row - 1) * tile)

        @pl.when(i == n_row - 1)
        def _():
            _merge(n_row - 1, k_last)


# ----------------------------------------------------------------------------
# Tiling (sized by bytes, batch axis blocked when large)
# ----------------------------------------------------------------------------
def _plan(sid, num_nodes, tot_nodes, B, block_bytes):
    # Batch (lane) blocking: keep blocks lane-dense, <= ~1024 lanes wide.
    bn = B
    if B > 1024:
        for cand in (1024, 896, 768, 640, 512, 384, 256, 128):
            if B % cand == 0:
                bn = cand
                break
    # Node-row tile: target ~block_bytes of f32 output per grid step.
    tile = (block_bytes // (bn * 4)) // 8 * 8
    tile = max(8, min(tile, 4096))
    tile = min(tile, max(8, ((num_nodes + 7) // 8) * 8))
    b0 = sid // tile
    front = sid - b0 * tile
    covered = ((front + num_nodes + tile - 1) // tile) * tile
    n_row = covered // tile
    n_col = B // bn
    return tile, bn, b0, front, covered, n_row, n_col


# ----------------------------------------------------------------------------
# Wrapper
# ----------------------------------------------------------------------------
@functools.partial(jax.jit,
                   static_argnames=("max_cats", "sid", "block_bytes"),
                   donate_argnames=("node_mars",))
def categorical_layer_forward(data, node_mars, params, vids, psids, *,
                              max_cats, sid, block_bytes=2 * 1024 * 1024):
    """Pallas implementation of CategoricalLayer._forward
    (missing_mask=None, no fw_local_ids).

      data:      [num_vars, B]       int32
      node_mars: [tot_num_nodes, B]  f32 (donated; updated via i/o aliasing)
      params:    [num_params]        f32
      vids:      [num_nodes]         int32
      psids:     [num_nodes]         int32

    Returns node_mars with rows [sid : sid + num_nodes) overwritten with
    log(clamp(params[psids[:, None] + data[vids]], 1e-10)); other rows kept.

    Divergence from the PyTorch layer on invalid input only: data values that
    are negative or >= max_cats produce log(1e-10) / category-0 instead of
    reading an out-of-range parameter.
    """
    num_nodes = int(vids.shape[0])
    tot_nodes = int(node_mars.shape[0])
    B = int(data.shape[1])
    assert num_nodes > 0 and data.ndim == 2 and node_mars.ndim == 2
    assert node_mars.shape[1] == B
    assert B % 128 == 0, "batch size must be a multiple of the 128-lane width"

    # TODO(synk): missing_mask / fw_local_ids paths of the PyTorch layer are
    # not implemented.

    tile, bn, b0, front, covered, n_row, n_col = _plan(
        sid, num_nodes, tot_nodes, B, block_bytes)
    back = covered - front - num_nodes
    merge_first = front > 0
    merge_last = back > 0
    need_merge = merge_first or merge_last

    # --- tiny glue: per-node category data + per-node log-prob slab ---------
    use_int8 = max_cats <= 127
    if use_int8:
        cap = min(127, max_cats)
        dsmall = jnp.clip(data, 0, cap).astype(jnp.int8)   # clamp BEFORE cast
    else:
        dsmall = jnp.clip(data.astype(jnp.int32), 0, max_cats)
    vids_p = jnp.pad(vids.astype(jnp.int32), (front, back))
    psids_p = jnp.pad(psids.astype(jnp.int32), (front, back))
    # TODO(synk): data[vids_p] still replicates each variable's data row once
    # per node (G-fold read amplification).  Killing it needs group-aligned
    # node tiles + scalar-prefetched per-block variable ids so each grid step
    # streams a single [1, B] data row and broadcasts it in-kernel.
    data_v = dsmall[vids_p]                                        # [rows, B]
    cat_idx = psids_p[:, None] + jnp.arange(max_cats, dtype=jnp.int32)
    cat_idx = jnp.clip(cat_idx, 0, params.shape[0] - 1)
    logp = jnp.log(jnp.maximum(params[cat_idx].astype(jnp.float32), 1e-10))

    kernel = functools.partial(
        _cat_fwd_kernel, max_cats=max_cats, tile=tile, bn=bn, b0=b0,
        front=front, num_valid=num_nodes, n_row=n_row, tot_rows=tot_nodes,
        merge_first=merge_first, merge_last=merge_last)

    scratch = []
    if need_merge:
        scratch = [pltpu.VMEM((tile, bn), node_mars.dtype),
                   pltpu.SemaphoreType.DMA(())]

    bytes_data = tile * bn * data_v.dtype.itemsize
    bytes_logp = tile * max_cats * 4
    bytes_out = tile * bn * node_mars.dtype.itemsize
    est = 2 * (bytes_data + bytes_logp + bytes_out) \
        + (bytes_out if need_merge else 0)
    vmem_limit = int(min(100 * 2**20, max(32 * 2**20, 2 * est)))

    return pl.pallas_call(
        kernel,
        out_shape=jax.ShapeDtypeStruct(node_mars.shape, node_mars.dtype),
        grid_spec=pltpu.PrefetchScalarGridSpec(
            num_scalar_prefetch=0,
            grid=(n_row, n_col),
            in_specs=[
                pl.BlockSpec((tile, bn), lambda i, j: (i, j)),         # data_v
                pl.BlockSpec((tile, max_cats), lambda i, j: (i, 0)),   # logp
                pl.BlockSpec(memory_space=pl.ANY),                     # node_mars
            ],
            out_specs=pl.BlockSpec((tile, bn), lambda i, j: (b0 + i, j)),
            scratch_shapes=scratch,
        ),
        input_output_aliases={2: 0},          # write straight into node_mars
        compiler_params=pltpu.CompilerParams(
            dimension_semantics=("parallel", "parallel"),
            vmem_limit_bytes=vmem_limit),
    )(data_v, logp, node_mars)


# ----------------------------------------------------------------------------
# Deterministic synthetic layer construction (mimics __init__ bookkeeping)
# ----------------------------------------------------------------------------
def build_layer(key, node_groups):
    """node_groups: list of (var, num_nodes, num_cats) untied node groups."""
    vids, psids, node_ids, num_cats_list = [], [], [], []
    cum_params, node_counter = 0, 0
    for (var, n_nodes, n_cats) in node_groups:
        for nid in range(n_nodes):
            vids.append(var)
            psids.append(cum_params + nid * n_cats)
            node_ids.extend([node_counter + nid] * n_cats)
            num_cats_list.append(n_cats)
        cum_params += n_nodes * n_cats
        node_counter += n_nodes
    vids = jnp.asarray(vids, dtype=jnp.int32)
    psids = jnp.asarray(psids, dtype=jnp.int32)
    node_ids = jnp.asarray(node_ids, dtype=jnp.int32)
    node_nchs = jnp.asarray(num_cats_list, dtype=jnp.int32)

    # _init_params: params = exp(rand * -4), then per-node normalization
    u = jax.random.uniform(key, (cum_params,), dtype=jnp.float32)
    params = jnp.exp(u * -4.0)
    sums = jax.ops.segment_sum(params, node_ids, num_segments=node_counter)
    params = params / sums[node_ids]
    return vids, psids, node_nchs, params


def run_case(key, node_groups, B, sid, tot_num_nodes, fill=-7.5):
    k_param, k_data = jax.random.split(key)
    vids, psids, node_nchs, params = build_layer(k_param, node_groups)
    num_nodes = int(vids.shape[0])
    max_cats = int(node_nchs.max())

    # data[v, b] in [0, num_cats of variable v)
    var_cats = {}
    for (v, _, c) in node_groups:
        var_cats[v] = min(c, var_cats.get(v, c))
    num_vars = max(var_cats) + 1
    cats = jnp.asarray([float(var_cats.get(v, 2)) for v in range(num_vars)],
                       dtype=jnp.float32)
    u = jax.random.uniform(k_data, (num_vars, B), dtype=jnp.float32)
    data = jnp.minimum(jnp.floor(u * cats[:, None]),
                       cats[:, None] - 1.0).astype(jnp.int32)

    node_mars = jnp.full((tot_num_nodes, B), fill, dtype=jnp.float32)
    out = categorical_layer_forward(data, node_mars, params, vids, psids,
                                    max_cats=max_cats, sid=sid)
    out = jax.block_until_ready(out)

    # pure-JAX reference of the PyTorch forward
    ref = jnp.log(jnp.maximum(params[data[vids] + psids[:, None]], 1e-10))
    got = out[sid:sid + num_nodes]
    assert out.shape == (tot_num_nodes, B)
    assert jnp.allclose(got, ref, atol=1e-6, rtol=1e-6), "mismatch vs reference"
    untouched = jnp.concatenate([out[:sid], out[sid + num_nodes:]], axis=0)
    assert jnp.all(untouched == fill), "rows outside the layer were modified"


if __name__ == "__main__":
    root = jax.random.PRNGKey(0)
    k1, k2, k3, k4 = jax.random.split(root, 4)

    # 1) unaligned layer offset, window overruns node_mars' row count ->
    #    front + back boundary merges, partial (masked) last output block
    run_case(k1, node_groups=[(0, 8, 4), (1, 8, 6), (2, 16, 3), (3, 8, 5)],
             B=128, sid=16, tot_num_nodes=64)
    # 2) tile-aligned layer -> pure blind-write path, node_mars never read
    run_case(k2, node_groups=[(0, 16, 5), (1, 32, 3), (2, 16, 7)],
             B=128, sid=64, tot_num_nodes=192)
    # 3) layer ends inside the last partial 8-row chunk of node_mars ->
    #    single boundary block with a length-clamped merge DMA
    run_case(k3, node_groups=[(0, 4, 3), (1, 6, 5)],
             B=128, sid=3, tot_num_nodes=13)
    # 4) large batch -> second grid axis over B (column-blocked merge DMAs)
    run_case(k4, node_groups=[(0, 12, 4), (1, 20, 9)],
             B=1280, sid=5, tot_num_nodes=48)

    print("KERNEL_OK")
</pallas_src>

<mosaic_0001>
module attributes {stable_mosaic.version = 11 : i64} {
  func.func @_cat_fwd_kernel(%arg0: i32, %arg1: i32, %arg2: memref<40x128xi8, #tpu.memory_space<vmem>>, %arg3: memref<40x6xf32, #tpu.memory_space<vmem>>, %arg4: memref<64x128xf32, #tpu.memory_space<any>>, %arg5: memref<40x128xf32, #tpu.memory_space<vmem>>, %arg6: memref<40x128xf32, #tpu.memory_space<vmem>>, %arg7: memref<!tpu.dma_semaphore, #tpu.memory_space<semaphore_mem>>) attributes {dimension_semantics = [#tpu.dimension_semantics<parallel>, #tpu.dimension_semantics<parallel>], iteration_bounds = array<i64: 2, 1>, scalar_prefetch = 0 : i64, scratch_operands = 2 : i64, tpu.core_type = #tpu.core_type<tc>, window_params = [{transform_indices = @transform_0, window_bounds = array<i64: 40, 128>}, {transform_indices = @transform_1, window_bounds = array<i64: 40, 6>}, {}, {transform_indices = @transform_3, window_bounds = array<i64: 40, 128>}]} {
    %c0 = arith.constant 0 : index
    %c0_0 = arith.constant 0 : index
    %0 = vector.load %arg2[%c0, %c0_0] : memref<40x128xi8, #tpu.memory_space<vmem>>, vector<40x128xi8>
    %1 = arith.extsi %0 : vector<40x128xi8> to vector<40x128xi32>
    %c0_1 = arith.constant 0 : index
    %c0_2 = arith.constant 0 : index
    %2 = vector.load %arg3[%c0_1, %c0_2] : memref<40x6xf32, #tpu.memory_space<vmem>>, vector<40x6xf32>
    %cst = arith.constant -23.0258503 : f32
    %3 = vector.broadcast %cst : f32 to vector<40x128xf32>
    %c0_i32 = arith.constant 0 : i32
    %4 = vector.broadcast %c0_i32 : i32 to vector<40x128xi32>
    %5 = arith.cmpi eq, %1, %4 : vector<40x128xi32>
    %6 = vector.extract_strided_slice %2 {offsets = [0, 0], sizes = [40, 1], strides = [1, 1]} : vector<40x6xf32> to vector<40x1xf32>
    %7 = vector.shape_cast %6 : vector<40x1xf32> to vector<40x1xf32>
    %8 = vector.broadcast %7 : vector<40x1xf32> to vector<40x128xf32>
    %9 = arith.select %5, %8, %3 : vector<40x128xi1>, vector<40x128xf32>
    %c1_i32 = arith.constant 1 : i32
    %10 = vector.broadcast %c1_i32 : i32 to vector<40x128xi32>
    %11 = arith.cmpi eq, %1, %10 : vector<40x128xi32>
    %12 = vector.extract_strided_slice %2 {offsets = [0, 1], sizes = [40, 1], strides = [1, 1]} : vector<40x6xf32> to vector<40x1xf32>
    %13 = vector.shape_cast %12 : vector<40x1xf32> to vector<40x1xf32>
    %14 = vector.broadcast %13 : vector<40x1xf32> to vector<40x128xf32>
    %15 = arith.select %11, %14, %9 : vector<40x128xi1>, vector<40x128xf32>
    %c2_i32 = arith.constant 2 : i32
    %16 = vector.broadcast %c2_i32 : i32 to vector<40x128xi32>
    %17 = arith.cmpi eq, %1, %16 : vector<40x128xi32>
    %18 = vector.extract_strided_slice %2 {offsets = [0, 2], sizes = [40, 1], strides = [1, 1]} : vector<40x6xf32> to vector<40x1xf32>
    %19 = vector.shape_cast %18 : vector<40x1xf32> to vector<40x1xf32>
    %20 = vector.broadcast %19 : vector<40x1xf32> to vector<40x128xf32>
    %21 = arith.select %17, %20, %15 : vector<40x128xi1>, vector<40x128xf32>
    %c3_i32 = arith.constant 3 : i32
    %22 = vector.broadcast %c3_i32 : i32 to vector<40x128xi32>
    %23 = arith.cmpi eq, %1, %22 : vector<40x128xi32>
    %24 = vector.extract_strided_slice %2 {offsets = [0, 3], sizes = [40, 1], strides = [1, 1]} : vector<40x6xf32> to vector<40x1xf32>
    %25 = vector.shape_cast %24 : vector<40x1xf32> to vector<40x1xf32>
    %26 = vector.broadcast %25 : vector<40x1xf32> to vector<40x128xf32>
    %27 = arith.select %23, %26, %21 : vector<40x128xi1>, vector<40x128xf32>
    %c4_i32 = arith.constant 4 : i32
    %28 = vector.broadcast %c4_i32 : i32 to vector<40x128xi32>
    %29 = arith.cmpi eq, %1, %28 : vector<40x128xi32>
    %30 = vector.extract_strided_slice %2 {offsets = [0, 4], sizes = [40, 1], strides = [1, 1]} : vector<40x6xf32> to vector<40x1xf32>
    %31 = vector.shape_cast %30 : vector<40x1xf32> to vector<40x1xf32>
    %32 = vector.broadcast %31 : vector<40x1xf32> to vector<40x128xf32>
    %33 = arith.select %29, %32, %27 : vector<40x128xi1>, vector<40x128xf32>
    %c5_i32 = arith.constant 5 : i32
    %34 = vector.broadcast %c5_i32 : i32 to vector<40x128xi32>
    %35 = arith.cmpi eq, %1, %34 : vector<40x128xi32>
    %36 = vector.extract_strided_slice %2 {offsets = [0, 5], sizes = [40, 1], strides = [1, 1]} : vector<40x6xf32> to vector<40x1xf32>
    %37 = vector.shape_cast %36 : vector<40x1xf32> to vector<40x1xf32>
    %38 = vector.broadcast %37 : vector<40x1xf32> to vector<40x128xf32>
    %39 = arith.select %35, %38, %33 : vector<40x128xi1>, vector<40x128xf32>
    %c0_i32_3 = arith.constant 0 : i32
    %40 = arith.cmpi eq, %arg0, %c0_i32_3 : i32
    %c1_i32_4 = arith.constant 1 : i32
    %41 = arith.cmpi eq, %arg0, %c1_i32_4 : i32
    %42 = arith.ori %40, %41 : i1
    %true = arith.constant true
    %43 = arith.xori %42, %true : i1
    %44 = arith.extui %43 : i1 to i32
    %c0_i32_5 = arith.constant 0 : i32
    %45 = arith.cmpi ne, %44, %c0_i32_5 : i32
    scf.if %45 {
      %c0_10 = arith.constant 0 : index
      %c0_11 = arith.constant 0 : index
      %55 = vector.load %arg5[%c0_10, %c0_11] : memref<40x128xf32, #tpu.memory_space<vmem>>, vector<40x128xf32>
      tpu.vector_store %arg5[%c0_10, %c0_11], %39 {strides = array<i32>} : memref<40x128xf32, #tpu.memory_space<vmem>>, vector<40x128xf32>,
    } else {
    }
    %c128_i32 = arith.constant 128 : i32
    %46 = arith.muli %arg1, %c128_i32 : i32
    %47 = tpu.assume_multiple %46, 128 : i32
    %48 = tpu.iota {dimensions = array<i32: 0>} : vector<40x1xi32>
    %c0_i32_6 = arith.constant 0 : i32
    %49 = arith.cmpi eq, %arg0, %c0_i32_6 : i32
    %50 = arith.extui %49 : i1 to i32
    %c0_i32_7 = arith.constant 0 : i32
    %51 = arith.cmpi ne, %50, %c0_i32_7 : i32
    scf.if %51 {
      %c0_i32_10 = arith.constant 0 : i32
      %55 = tpu.memref_slice %arg4[%c0_i32_10, %47] : memref<64x128xf32, #tpu.memory_space<any>> -> memref<40x128xf32, #tpu.memory_space<any>>
      %c0_i32_11 = arith.constant 0 : i32
      %c0_i32_12 = arith.constant 0 : i32
      %56 = tpu.memref_slice %arg6[%c0_i32_11, %c0_i32_12] : memref<40x128xf32, #tpu.memory_space<vmem>> -> memref<40x128xf32, #tpu.memory_space<vmem>>
      tpu.enqueue_dma source(%55 : memref<40x128xf32, #tpu.memory_space<any>>) target(%56 : memref<40x128xf32, #tpu.memory_space<vmem>>) target_semaphore(%arg7 : memref<!tpu.dma_semaphore, #tpu.memory_space<semaphore_mem>>)
      %c0_i32_13 = arith.constant 0 : i32
      %57 = tpu.memref_slice %arg4[%c0_i32_13, %47] : memref<64x128xf32, #tpu.memory_space<any>> -> memref<40x128xf32, #tpu.memory_space<any>>
      %c0_i32_14 = arith.constant 0 : i32
      %c0_i32_15 = arith.constant 0 : i32
      %58 = tpu.memref_slice %arg6[%c0_i32_14, %c0_i32_15] : memref<40x128xf32, #tpu.memory_space<vmem>> -> memref<40x128xf32, #tpu.memory_space<vmem>>
      tpu.wait_dma2 semaphore(%arg7 : memref<!tpu.dma_semaphore, #tpu.memory_space<semaphore_mem>>) src(%57 : memref<40x128xf32, #tpu.memory_space<any>>) dst(%58 : memref<40x128xf32, #tpu.memory_space<vmem>>)
      %c0_i32_16 = arith.constant 0 : i32
      %59 = vector.broadcast %c0_i32_16 : i32 to vector<40x1xi32>
      %60 = arith.addi %59, %48 : vector<40x1xi32>
      %c16_i32 = arith.constant 16 : i32
      %61 = vector.broadcast %c16_i32 : i32 to vector<40x1xi32>
      %62 = arith.cmpi sge, %60, %61 : vector<40x1xi32>
      %c56_i32 = arith.constant 56 : i32
      %63 = vector.broadcast %c56_i32 : i32 to vector<40x1xi32>
      %64 = arith.cmpi slt, %60, %63 : vector<40x1xi32>
      %65 = arith.andi %62, %64 : vector<40x1xi1>
      %c0_17 = arith.constant 0 : index
      %c0_18 = arith.constant 0 : index
      %66 = vector.load %arg6[%c0_17, %c0_18] : memref<40x128xf32, #tpu.memory_space<vmem>>, vector<40x128xf32>
      %67 = vector.shape_cast %65 : vector<40x1xi1> to vector<40x1xi1>
      %68 = vector.broadcast %67 : vector<40x1xi1> to vector<40x128xi1>
      %69 = arith.select %68, %39, %66 : vector<40x128xi1>, vector<40x128xf32>
      %c0_19 = arith.constant 0 : index
      %c0_20 = arith.constant 0 : index
      %70 = vector.load %arg5[%c0_19, %c0_20] : memref<40x128xf32, #tpu.memory_space<vmem>>, vector<40x128xf32>
      tpu.vector_store %arg5[%c0_19, %c0_20], %69 {strides = array<i32>} : memref<40x128xf32, #tpu.memory_space<vmem>>, vector<40x128xf32>,
    } else {
    }
    %c1_i32_8 = arith.constant 1 : i32
    %52 = arith.cmpi eq, %arg0, %c1_i32_8 : i32
    %53 = arith.extui %52 : i1 to i32
    %c0_i32_9 = arith.constant 0 : i32
    %54 = arith.cmpi ne, %53, %c0_i32_9 : i32
    scf.if %54 {
      %c40_i32 = arith.constant 40 : i32
      %55 = tpu.memref_slice %arg4[%c40_i32, %47] : memref<64x128xf32, #tpu.memory_space<any>> -> memref<24x128xf32, #tpu.memory_space<any>>
      %c0_i32_10 = arith.constant 0 : i32
      %c0_i32_11 = arith.constant 0 : i32
      %56 = tpu.memref_slice %arg6[%c0_i32_10, %c0_i32_11] : memref<40x128xf32, #tpu.memory_space<vmem>> -> memref<24x128xf32, #tpu.memory_space<vmem>>
      tpu.enqueue_dma source(%55 : memref<24x128xf32, #tpu.memory_space<any>>) target(%56 : memref<24x128xf32, #tpu.memory_space<vmem>>) target_semaphore(%arg7 : memref<!tpu.dma_semaphore, #tpu.memory_space<semaphore_mem>>)
      %c40_i32_12 = arith.constant 40 : i32
      %57 = tpu.memref_slice %arg4[%c40_i32_12, %47] : memref<64x128xf32, #tpu.memory_space<any>> -> memref<24x128xf32, #tpu.memory_space<any>>
      %c0_i32_13 = arith.constant 0 : i32
      %c0_i32_14 = arith.constant 0 : i32
      %58 = tpu.memref_slice %arg6[%c0_i32_13, %c0_i32_14] : memref<40x128xf32, #tpu.memory_space<vmem>> -> memref<24x128xf32, #tpu.memory_space<vmem>>
      tpu.wait_dma2 semaphore(%arg7 : memref<!tpu.dma_semaphore, #tpu.memory_space<semaphore_mem>>) src(%57 : memref<24x128xf32, #tpu.memory_space<any>>) dst(%58 : memref<24x128xf32, #tpu.memory_space<vmem>>)
      %c40_i32_15 = arith.constant 40 : i32
      %59 = vector.broadcast %c40_i32_15 : i32 to vector<40x1xi32>
      %60 = arith.addi %59, %48 : vector<40x1xi32>
      %c16_i32 = arith.constant 16 : i32
      %61 = vector.broadcast %c16_i32 : i32 to vector<40x1xi32>
      %62 = arith.cmpi sge, %60, %61 : vector<40x1xi32>
      %c56_i32 = arith.constant 56 : i32
      %63 = vector.broadcast %c56_i32 : i32 to vector<40x1xi32>
      %64 = arith.cmpi slt, %60, %63 : vector<40x1xi32>
      %65 = arith.andi %62, %64 : vector<40x1xi1>
      %c0_16 = arith.constant 0 : index
      %c0_17 = arith.constant 0 : index
      %66 = vector.load %arg6[%c0_16, %c0_17] : memref<40x128xf32, #tpu.memory_space<vmem>>, vector<40x128xf32>
      %67 = vector.shape_cast %65 : vector<40x1xi1> to vector<40x1xi1>
      %68 = vector.broadcast %67 : vector<40x1xi1> to vector<40x128xi1>
      %69 = arith.select %68, %39, %66 : vector<40x128xi1>, vector<40x128xf32>
      %c0_18 = arith.constant 0 : index
      %c0_19 = arith.constant 0 : index
      %70 = vector.load %arg5[%c0_18, %c0_19] : memref<40x128xf32, #tpu.memory_space<vmem>>, vector<40x128xf32>
      tpu.vector_store %arg5[%c0_18, %c0_19], %69 {strides = array<i32>} : memref<40x128xf32, #tpu.memory_space<vmem>>, vector<40x128xf32>,
    } else {
    }
    return
  }
  func.func @transform_0(%arg0: i32, %arg1: i32) -> (i32, i32) {
    %c0_i32 = arith.constant 0 : i32
    return %arg0, %arg1 : i32, i32
  }
  func.func @transform_1(%arg0: i32, %arg1: i32) -> (i32, i32) {
    %c0_i32 = arith.constant 0 : i32
    %c0_i32_0 = arith.constant 0 : i32
    return %arg0, %c0_i32 : i32, i32
  }
  func.func @transform_3(%arg0: i32, %arg1: i32) -> (i32, i32) {
    %c0_i32 = arith.constant 0 : i32
    %0 = arith.addi %c0_i32, %arg0 : i32
    %c0_i32_0 = arith.constant 0 : i32
    return %0, %arg1 : i32, i32
  }
}

</mosaic_0001>

<bundles_post_ra>
// kernel: categorical_layer_forward.1
= control target key start
LH: loop header
LB: loop body
LE: loop exit
PB: predicated region body
PF: predicated region fallthrough
CT: control target
= control target key end

     0   :  { %8 = vsyncpa [#allocation5], 0  ;;  %s1159_s0 = inlined_call_operand.vmem [shape: s8[80,128], index: 0, kind: input, shape index: {}]   ;;  %s1160_s1 = inlined_call_operand.vmem [shape: f32[80,6], index: 1, kind: input, shape index: {}]   ;;  %s1161_s2 = inlined_call_operand.hbm [shape: f32[64,128], index: 2, kind: input, shape index: {}, may-alias: {2,3}]   ;;  %s1162_s3 = inlined_call_operand.hbm [shape: f32[64,128], index: 3, kind: output, shape index: {}, may-alias: {2,3}]  }
   0x1   :  { %10 = vsyncpa [#allocation5 + $0x1], 0  ;;  %s928_s12 = smov 0   ;;  %s930_s13 = smov 0  }
   0x2   :  { %s932_s14 = smov 0   ;;  %s934_s15 = smov 0  }
   0x3   :  { %s936_s16 = smov 0   ;;  %s938_s17 = smov 0  }
   0x4 LB: > { %s662_s18 = sadd.s32 4294967295, %s895_s17   ;;  %s663_s19 = sadd.s32 4294967294, %s895_s17   ;;  %s895_s17 = sphi %s938_s17, %s16_s17   ;;  %s891_s16 = sphi %s936_s16, %s1170_s16   ;;  %s887_s15 = sphi %s934_s15, %s1169_s15   ;;  %s883_s14 = sphi %s932_s14, %s1168_s14   ;;  %s879_s13 = sphi %s930_s13, %s1167_s13   ;;  %s875_s12 = sphi %s928_s12, %s1166_s12  }
   0x5   : > { %s28_s20 = sadd.s32 1, %s891_s16  ;;  %s91_s21 = sadd.s32 1, %s883_s14 }
   0x6   : > { %p30_p0 = scmp.ge.s32.totalorder %s28_s20, 2  ;;  %p101_p1 = scmp.ne.s32.totalorder %s883_s14, %s879_s13 }
   0x7   : > { %p102_p2 = scmp.eq.s32.totalorder %s662_s18, 1  ;;  %p107_p3 = scmp.ne.s32.totalorder %s879_s13, %s875_s12 }
   0x8   : > { %s1172_s20 = smov (%p30_p0, %s28_s20), 0  ;;  %p108_p5 = scmp.eq.s32.totalorder %s663_s19, 1 }
   0x9   : > { %p968_p4 = por %p102_p2, %p101_p1  ;;  %s86_s23 = ssub.s32 %s891_s16, %s1172_s20 }
   0xa   : > { %p666_p6 = scmp.ge.s32.totalorder %s895_s17, 1  ;;  %p89_p7 = scmp.eq.s32.totalorder %s86_s23, 0 }
   0xb   : > { %p975_p8 = por %p108_p5, %p107_p3  ;;  %p147_p9 = scmp.lt.s32.totalorder %s895_s17, 3 }
   0xc   : > { %s981_s25 = scalar_select %p89_p7, %s883_s14, %s91_s21  }
   0xd   : > { %p148_p10 = pnand %p666_p6, %p147_p9 }
   0xe   : > { %s984_s26 = smul.u32 (!%p148_p10), 5, %s887_s15  ;;  %v897_v0 = vmov (!%p148_p10), 0   ;;  %v898_v6 = vmov (!%p148_p10), 1   ;;  %v899_v7 = vmov (!%p148_p10), 2   ;;  %v900_v8 = vmov (!%p148_p10), 3   ;;  %s174_s5 = sand.u32 (!%p148_p10), 1, %s879_s13  }
   0xf   : > { %151 = sbr.rel (%p148_p10) target bundleno = 312 (0x138), region = 28  ;;  %755 = vset.pattern.permute.xlu1 (!%p148_p10), %v897_v0  ;;  %754 = vset.pattern.permute.xlu0 (!%p148_p10), %v897_v0  ;;  %v901_v9 = vmov (!%p148_p10), 4   ;;  %v902_v10 = vmov (!%p148_p10), 5   ;;  %p397_p12 = scmp.eq.s32.totalorder (!%p148_p10), %s887_s15, 0 }
  0x10   : > { %p178_p11 = scmp.lt.s32.totalorder (!%p148_p10), %s984_s26, 9  ;;  %s997_s6 = smul.u32 (!%p148_p10), 40, %s174_s5 }
  0x11   : > { %p398_p13 = scmp.eq.s32.totalorder (!%p148_p10), %s887_s15, 1 }
  0x12   : > { %s1040_s18 = scalar_lea.vmem (!%p148_p10), [#allocation4], %s997_s6 }
  0x13   : > { %p1001_p0 = por (!%p148_p10), %p398_p13, %p397_p12 }
  0x16   : > { %s988_s27 = scalar_select %p178_p11, %s984_s26, 9 }
  0x18   : > { %s668_s28 = sshll.u32 %s988_s27, 3  ;;  %s667_s8 = sshll.u32 %s988_s27, 1 }
  0x19   : > { %s190_s4 = scalar_lea.vmem %s1160_s1, %s668_s28  ;;  %s184_s11 = scalar_lea.vmem %s1159_s0, %s667_s8 }
  0x1a   : > { %v209_v1 = vld [vmem:[%s190_s4 + $0x10] sm:$0xff]  ;;  %v207_v2 = vld [vmem:[%s190_s4] sm:$0xff]  ;;  %v210_v3 = vld [vmem:[%s190_s4 + $0x18] sm:$0xff] }
  0x1b   : > { %229 = vperm.xlu1 %755, %v209_v1   ;;  %219 = vperm.xlu0 %754, %v207_v2   ;;  %v208_v4 = vld [vmem:[%s190_s4 + $0x8] sm:$0xff]  ;;  %v211_v5 = vld [vmem:[%s190_s4 + $0x20] sm:$0xff] }
  0x1c   : > { %v688_v27 = vld [vmem:[%s184_s11] sm:$0xff]   ;;  %v201_v31 = vld [vmem:[%s184_s11 + $0x8] sm:$0x3] }
  0x1d   : > { %v683_v30 = vunpack.c.1.s8 %v688_v27  ;;  %v206_v33 = vunpack.c.0.s8 %v201_v31  ;;  %v682_v41 = vunpack.c.0.s8 %v688_v27  ;;  %v686_v53 = vunpack.c.2.s8 %v688_v27 }
  0x1e   : > { %v687_v57 = vunpack.c.3.s8 %v688_v27 }
  0x1f   : > { %234 = vperm.xlu1 %755, %v210_v3   ;;  %224 = vperm.xlu0 %754, %v208_v4   ;;  %vm213_vm0 = vcmp.eq.s32.totalorder %v683_v30, 0  ;;  %vm248_vm1 = vcmp.eq.s32.totalorder %v683_v30, 1  ;;  %vm216_vm2 = vcmp.eq.s32.totalorder %v206_v33, 0  ;;  %vm278_vm3 = vcmp.eq.s32.totalorder %v683_v30, 2 }
  0x20   : > { %vm308_vm4 = vcmp.eq.s32.totalorder %v683_v30, 3  ;;  %vm338_vm5 = vcmp.eq.s32.totalorder %v683_v30, 4  ;;  %vm251_vm6 = vcmp.eq.s32.totalorder %v206_v33, 1  ;;  %vm368_vm7 = vcmp.eq.s32.totalorder %v683_v30, 5 }
  0x21   : > { %vm281_vm8 = vcmp.eq.s32.totalorder %v206_v33, 2  ;;  %vm311_vm9 = vcmp.eq.s32.totalorder %v206_v33, 3  ;;  %vm341_vm10 = vcmp.eq.s32.totalorder %v206_v33, 4  ;;  %vm371_vm11 = vcmp.eq.s32.totalorder %v206_v33, 5 }
  0x22   : > { %vm212_vm12 = vcmp.eq.s32.totalorder %v682_v41, 0  ;;  %vm247_vm13 = vcmp.eq.s32.totalorder %v682_v41, 1  ;;  %vm277_vm14 = vcmp.eq.s32.totalorder %v682_v41, 2  ;;  %vm307_vm15 = vcmp.eq.s32.totalorder %v682_v41, 3 }
  0x23   : > { %756 = vset.pattern.permute.xlu1 %v898_v6  ;;  %239 = vperm.xlu0 %754, %v211_v5  }
  0x24   : > { %253 = vperm.xlu1 %756, %v207_v2  }
  0x27   : > { %757 = vset.pattern.permute.xlu0 %v898_v6 }
  0x28   : > { %261 = vperm.xlu1 %756, %v209_v1   ;;  %257 = vperm.xlu0 %757, %v208_v4  }
  0x2c   : > { %265 = vperm.xlu1 %756, %v210_v3   ;;  %269 = vperm.xlu0 %757, %v211_v5  }
  0x30   : > { %758 = vset.pattern.permute.xlu1 %v899_v7  ;;  %759 = vset.pattern.permute.xlu0 %v899_v7 }
  0x31   : > { %283 = vperm.xlu1 %758, %v207_v2   ;;  %287 = vperm.xlu0 %759, %v208_v4  }
  0x35   : > { %291 = vperm.xlu1 %758, %v209_v1   ;;  %299 = vperm.xlu0 %759, %v211_v5  }
  0x39   : > { %295 = vperm.xlu1 %758, %v210_v3   ;;  %761 = vset.pattern.permute.xlu0 %v900_v8 }
  0x3a   : > { %317 = vperm.xlu0 %761, %v208_v4  }
  0x3d   : > { %760 = vset.pattern.permute.xlu1 %v900_v8 }
  0x3e   : > { %313 = vperm.xlu1 %760, %v207_v2   ;;  %329 = vperm.xlu0 %761, %v211_v5  }
  0x42   : > { %321 = vperm.xlu1 %760, %v209_v1   ;;  %763 = vset.pattern.permute.xlu0 %v901_v9 }
  0x43   : > { %347 = vperm.xlu0 %763, %v208_v4  }
  0x46   : > { %325 = vperm.xlu1 %760, %v210_v3  }
  0x47   : > { %359 = vperm.xlu0 %763, %v211_v5  }
  0x4a   : > { %762 = vset.pattern.permute.xlu1 %v901_v9 }
  0x4b   : > { %343 = vperm.xlu1 %762, %v207_v2   ;;  %765 = vset.pattern.permute.xlu0 %v902_v10 }
  0x4c   : > { %377 = vperm.xlu0 %765, %v208_v4  }
  0x4f   : > { %351 = vperm.xlu1 %762, %v209_v1  }
  0x50   : > { %389 = vperm.xlu0 %765, %v211_v5  }
  0x53   : > { %355 = vperm.xlu1 %762, %v210_v3  }
  0x57   : > { %764 = vset.pattern.permute.xlu1 %v902_v10 }
  0x58   : > { %373 = vperm.xlu1 %764, %v207_v2  }
  0x5c   : > { %381 = vperm.xlu1 %764, %v209_v1  }
  0x60   : > { %385 = vperm.xlu1 %764, %v210_v3  }
  0x9a   : > { %v1005_v11 = vpop.permute.xlu1 %229  ;;  %v220_v12 = vpop.permute.xlu0 %219 }
  0x9b   : > { %v242_v55 = vsel %vm212_vm12, %v220_v12, -23.02585  ;;  %vm340_vm12 = vcmp.eq.s32.totalorder %v687_v57, 4 }
  0x9e   : > { %v1007_v13 = vpop.permute.xlu1 %234  ;;  %v225_v14 = vpop.permute.xlu0 %224 }
  0x9f   : > { %v243_v35 = vsel %vm213_vm0, %v225_v14, -23.02585  ;;  %vm214_vm0 = vcmp.eq.s32.totalorder %v686_v53, 0 }
  0xa0   : > { %v244_v61 = vsel %vm214_vm0, %v1005_v11, -23.02585 }
  0xa2   : > { %v240_v15 = vpop.permute.xlu0 %239 }
  0xa3   : > { %v254_v16 = vpop.permute.xlu1 %253  ;;  %v246_v39 = vsel %vm216_vm2, %v240_v15, -23.02585  ;;  %vm249_vm2 = vcmp.eq.s32.totalorder %v686_v53, 1 }
  0xa4   : > { %v272_v58 = vsel %vm247_vm13, %v254_v16, %v242_v55  ;;  %vm370_vm13 = vcmp.eq.s32.totalorder %v687_v57, 5 }
  0xa7   : > { %v1009_v17 = vpop.permute.xlu1 %261  ;;  %v258_v18 = vpop.permute.xlu0 %257 }
  0xa8   : > { %v273_v38 = vsel %vm248_vm1, %v258_v18, %v243_v35  ;;  %vm337_vm1 = vcmp.eq.s32.totalorder %v682_v41, 4  ;;  %v274_v0 = vsel %vm249_vm2, %v1009_v17, %v244_v61 }
  0xab   : > { %v1011_v19 = vpop.permute.xlu1 %265  ;;  %v270_v20 = vpop.permute.xlu0 %269 }
  0xac   : > { %v276_v46 = vsel %vm251_vm6, %v270_v20, %v246_v39  ;;  %vm215_vm6 = vcmp.eq.s32.totalorder %v687_v57, 0 }
  0xad   : > { %v245_v4 = vsel %vm215_vm6, %v1007_v13, -23.02585 }
  0xb0   : > { %v284_v21 = vpop.permute.xlu1 %283  ;;  %v288_v22 = vpop.permute.xlu0 %287 }
  0xb1   : > { %v303_v40 = vsel %vm278_vm3, %v288_v22, %v273_v38  ;;  %v302_v59 = vsel %vm277_vm14, %v284_v21, %v272_v58  ;;  %vm367_vm3 = vcmp.eq.s32.totalorder %v682_v41, 5 }
  0xb4   : > { %v1013_v23 = vpop.permute.xlu1 %291  ;;  %v300_v24 = vpop.permute.xlu0 %299 }
  0xb5   : > { %v306_v48 = vsel %vm281_vm8, %v300_v24, %v276_v46  ;;  %vm250_vm8 = vcmp.eq.s32.totalorder %v687_v57, 1 }
  0xb6   : > { %v275_v7 = vsel %vm250_vm8, %v1011_v19, %v245_v4 }
  0xb8   : > { %v1016_v25 = vpop.permute.xlu1 %295 }
  0xb9   : > { %v318_v26 = vpop.permute.xlu0 %317 }
  0xba   : > { %v333_v42 = vsel %vm308_vm4, %v318_v26, %v303_v40  ;;  %vm279_vm4 = vcmp.eq.s32.totalorder %v686_v53, 2 }
  0xbb   : > { %v304_v2 = vsel %vm279_vm4, %v1013_v23, %v274_v0 }
  0xbd   : > { %v314_v28 = vpop.permute.xlu1 %313  ;;  %v330_v29 = vpop.permute.xlu0 %329 }
  0xbe   : > { %v336_v49 = vsel %vm311_vm9, %v330_v29, %v306_v48  ;;  %v332_v60 = vsel %vm307_vm15, %v314_v28, %v302_v59  ;;  %vm369_vm9 = vcmp.eq.s32.totalorder %v686_v53, 5 }
  0xc1   : > { %v1021_v32 = vpop.permute.xlu1 %321 }
  0xc2   : > { %v348_v34 = vpop.permute.xlu0 %347 }
  0xc3   : > { %v363_v44 = vsel %vm338_vm5, %v348_v34, %v333_v42  ;;  %vm309_vm5 = vcmp.eq.s32.totalorder %v686_v53, 3 }
  0xc4   : > { %v334_v3 = vsel %vm309_vm5, %v1021_v32, %v304_v2 }
  0xc5   : > { %v1023_v36 = vpop.permute.xlu1 %325 }
  0xc6   : > { %v360_v37 = vpop.permute.xlu0 %359 }
  0xc7   : > { %v366_v51 = vsel %vm341_vm10, %v360_v37, %v336_v49  ;;  %vm280_vm10 = vcmp.eq.s32.totalorder %v687_v57, 2 }
  0xc8   : > { %v305_v9 = vsel %vm280_vm10, %v1016_v25, %v275_v7 }
  0xca   : > { %v344_v43 = vpop.permute.xlu1 %343 }
  0xcb   : > { %v378_v45 = vpop.permute.xlu0 %377  ;;  %v362_v62 = vsel %vm337_vm1, %v344_v43, %v332_v60 }
  0xcc   : > { %v1025_v47 = vsel %vm368_vm7, %v378_v45, %v363_v44  ;;  %vm339_vm7 = vcmp.eq.s32.totalorder %v686_v53, 4 }
  0xcd   : > { %404 = vst [vmem:[%s1040_s18 + $0x8] sm:$0xff] (!%p1001_p0), %v1025_v47 }
  0xce   : > { %v352_v50 = vpop.permute.xlu1 %351 }
  0xcf   : > { %v390_v52 = vpop.permute.xlu0 %389  ;;  %v364_v5 = vsel %vm339_vm7, %v352_v50, %v334_v3 }
  0xd0   : > { %v1027_v54 = vsel %vm371_vm11, %v390_v52, %v366_v51  ;;  %vm310_vm11 = vcmp.eq.s32.totalorder %v687_v57, 3 }
  0xd1   : > { %v335_v10 = vsel %vm310_vm11, %v1023_v36, %v305_v9  ;;  %407 = vst [vmem:[%s1040_s18 + $0x20] sm:$0xff] (!%p1001_p0), %v1027_v54 }
  0xd2   : > { %v356_v56 = vpop.permute.xlu1 %355 }
  0xd3   : > { %v365_v11 = vsel %vm340_vm12, %v356_v56, %v335_v10 }
  0xd7   : > { %v374_v63 = vpop.permute.xlu1 %373 }
  0xd8   : > { %v1031_v1 = vsel %vm367_vm3, %v374_v63, %v362_v62 }
  0xd9   : > { %403 = vst [vmem:[%s1040_s18] sm:$0xff] (!%p1001_p0), %v1031_v1 }
  0xda   : > { %402 = sbr.rel (%p1001_p0) target bundleno = 226 (0xe2), region = 32 }
  0xdb   : > { %v382_v6 = vpop.permute.xlu1 %381 }
  0xdc   : > { %v394_v8 = vsel %vm369_vm9, %v382_v6, %v364_v5 }
  0xdd   : > { %405 = vst [vmem:[%s1040_s18 + $0x10] sm:$0xff] (!%p1001_p0), %v394_v8 }
  0xdf   : > { %v386_v12 = vpop.permute.xlu1 %385 }
  0xe0   : > { %v395_v14 = vsel %vm370_vm13, %v386_v12, %v365_v11 }
  0xe1   : > { %406 = vst [vmem:[%s1040_s18 + $0x18] sm:$0xff] %v395_v14 }
  0xe2 PF: > { %p669_p1 = scmp.ne.s32.totalorder %s887_s15, 0 }
  0xe3   : > { %s903_s19 = smov (!%p669_p1), [#allocation2]   ;;  %s766_s28 = scalar_lea.hbm (!%p669_p1), %s1161_s2, 640 }
  0xe4   : > { %417 = sbr.rel (%p669_p1) target bundleno = 250 (0xfa), region = 36  ;;  %s429_s21 = sshll.u32 (!%p669_p1), %s903_s19, 4  ;;  %s430_s21 = int_to_ptr.vmem [resolvable:$true] %s429_s21 }
  0xe5   : > { %p767_p2 = scmp.ne.s32.totalorder (!%p669_p1), %s1161_s2, %s766_s28  ;;  %s768_s7 = scalar_lea.hbm (!%p669_p1), %s1161_s2, 1024 }
  0xe6   : > { %p769_p3 = scmp.lt.u32.totalorder (!%p669_p1), %s768_s7, %s766_s28  ;;  %p770_p5 = scmp.lt.u32.totalorder (!%p669_p1), %s766_s28, %s1161_s2 }
  0xe8   : > { %p771_p6 = por (!%p669_p1), %p770_p5, %p769_p3 }
  0xea   : > { %p772_p7 = pnand (!%p669_p1), %p771_p6, %p767_p2 }
  0xec   : > { %775 = shalt.err (!%p772_p7)  }
  0xed   : > { %s776_s10 = scalar_lea.vmem %s430_s21, 640  ;;  %p781_p10 = scmp.lt.s32.totalorder %s430_s21, %s430_s21 }
  0xee   : > { %p777_p9 = scmp.ne.s32.totalorder %s430_s21, %s776_s10  ;;  %p782_p11 = scmp.lt.s32.totalorder %s776_s10, %s776_s10 }
  0xf0   : > { %p783_p12 = por %p782_p11, %p781_p10 }
  0xf2   : > { %p784_p13 = pnand %p783_p12, %p777_p9 }
  0xf4   : > { %787 = shalt.err (!%p784_p13)  }
  0xf5   : > { %432 = dma.hbm_to_vmem [thread:$0]  %s1161_s2, 640, %s430_s21, [#allocation3] }
  0xf6   : > { %865 = dma.done.wait [#allocation3], 640 }
  0xf7   : > { %866 = vsyncadd [#allocation3], 4294966656  ;;  %473 = vst [vmem:[%s1040_s18 + $0x10] sm:$0xff] %v394_v8  ;;  %v451_v13 = vld [vmem:[#allocation2] sm:$0xff]  ;;  %v452_v15 = vld [vmem:[#allocation2 + $0x8] sm:$0xff] }
  0xf8   : > { %474 = vst [vmem:[%s1040_s18 + $0x18] sm:$0xff] %v395_v14  ;;  %475 = vst [vmem:[%s1040_s18 + $0x20] sm:$0xff] %v1027_v54 }
  0xf9   : > { %471 = vst [vmem:[%s1040_s18] sm:$0xff] %v451_v13  ;;  %472 = vst [vmem:[%s1040_s18 + $0x8] sm:$0xff] %v452_v15 }
  0xfa PF: > { %p670_p0 = scmp.ne.s32.totalorder %s887_s15, 1 }
  0xfb   : > { %s616_s27 = scalar_lea.hbm (!%p670_p0), %s1161_s2, 640  ;;  %s904_s28 = smov (!%p670_p0), [#allocation2]  }
  0xfc   : > { %478 = sbr.rel (%p670_p0) target bundleno = 277 (0x115), region = 44  ;;  %s491_s29 = sshll.u32 (!%p670_p0), %s904_s28, 4  ;;  %s492_s29 = int_to_ptr.vmem [resolvable:$true] %s491_s29 }
  0xfd   : > { %s812_s6 = scalar_lea.hbm (!%p670_p0), %s1161_s2, 1024  ;;  %p791_p2 = scmp.lt.u32.totalorder (!%p670_p0), %s616_s27, %s1161_s2 }
  0xfe   : > { %p789_p1 = scmp.ne.s32.totalorder (!%p670_p0), %s616_s27, %s812_s6  ;;  %p792_p3 = scmp.lt.u32.totalorder (!%p670_p0), %s812_s6, %s812_s6 }
  0xff   : > { %p794_p6 = scmp.lt.u32.totalorder (!%p670_p0), %s812_s6, %s616_s27 }
 0x100   : > { %p793_p5 = por (!%p670_p0), %p792_p3, %p791_p2 }
 0x102   : > { %p795_p7 = por (!%p670_p0), %p794_p6, %p793_p5 }
 0x104   : > { %p796_p9 = pnand %p795_p7, %p789_p1 }
 0x106   : > { %799 = shalt.err (!%p796_p9)  }
 0x107   : > { %s800_s9 = scalar_lea.vmem %s492_s29, 384  ;;  %s804_s10 = scalar_lea.vmem %s492_s29, 640 }
 0x108   : > { %p801_p10 = scmp.ne.s32.totalorder %s492_s29, %s800_s9  ;;  %p805_p11 = scmp.lt.s32.totalorder %s492_s29, %s492_s29 }
 0x109   : > { %p806_p12 = scmp.lt.s32.totalorder %s804_s10, %s800_s9 }
 0x10b   : > { %p807_p13 = por %p806_p12, %p805_p11 }
 0x10d   : > { %p808_p0 = pnand %p807_p13, %p801_p10 }
 0x10f   : > { %811 = shalt.err (!%p808_p0)  }
 0x110   : > { %494 = dma.hbm_to_vmem [thread:$0]  %s616_s27, 384, %s492_s29, [#allocation3] }
 0x111   : > { %867 = dma.done.wait [#allocation3], 384 }
 0x112   : > { %868 = vsyncadd [#allocation3], 4294966912  ;;  %538 = vst [vmem:[%s1040_s18] sm:$0xff] %v1031_v1  ;;  %v520_v16 = vld [vmem:[#allocation2 + $0x10] sm:$0xff]  ;;  %v521_v17 = vld [vmem:[#allocation2 + $0x18] sm:$0xff] }
 0x113   : > { %539 = vst [vmem:[%s1040_s18 + $0x8] sm:$0xff] %v1025_v47  ;;  %v522_v18 = vld [vmem:[#allocation2 + $0x20] sm:$0xff]  ;;  %540 = vst [vmem:[%s1040_s18 + $0x10] sm:$0xff] %v520_v16 }
 0x114   : > { %541 = vst [vmem:[%s1040_s18 + $0x18] sm:$0xff] %v521_v17  ;;  %542 = vst [vmem:[%s1040_s18 + $0x20] sm:$0xff] %v522_v18 }
 0x115 PF: > { %s1093_s11 = scalar_lea.sflag [#allocation5], %s174_s5  ;;  %550 = sbr.rel (!%p968_p4) target bundleno = 312 (0x138), region = 52 }
 0x116   : > { %s552_s19 = ssub.s32 (%p968_p4), 8, %s984_s26 }
 0x117   : > { %p553_p1 = scmp.lt.s32.totalorder (%p968_p4), %s552_s19, 5 }
 0x11c   : > { %s1174_s19 = smov (!%p553_p1, %s552_s19), 5 }
 0x11d   : > { %s1098_s21 = sshll.u32 %s1174_s19, 7 }
 0x11e   : > { %s557_s23 = ssub.s32 640, %s1098_s21 }
 0x11f   : > { %558 = vsyncadd %s1093_s11, %s557_s23  ;;  %p672_p2 = scmp.ne.s32.totalorder %s1098_s21, 0  ;;  %s679_s5 = smul.u32 640, %s887_s15 }
 0x120   : > { %s564_s27 = sshll.u32 %s1040_s18, 4  ;;  %s905_s30 = smov [#allocation4]   ;;  %s1110_s27 = int_to_ptr.vmem [resolvable:$true] %s564_s27 }
 0x121   : > { %s1108_s29 = scalar_lea.hbm %s1162_s3, %s679_s5  ;;  %s813_s26 = scalar_lea.vmem %s1110_s27, %s1098_s21 }
 0x122   : > { %p814_p4 = scmp.ne.s32.totalorder %s1110_s27, %s813_s26  ;;  %s817_s4 = sshll.u32 %s905_s30, 4  ;;  %s818_s4 = int_to_ptr.vmem [resolvable:$false] %s817_s4 }
 0x123   : > { %s819_s15 = scalar_lea.vmem %s818_s4, 1280  ;;  %p820_p6 = scmp.lt.s32.totalorder %s1110_s27, %s818_s4 }
 0x124   : > { %p815_p3 = pnand %p814_p4, %p672_p2  ;;  %p821_p7 = scmp.lt.s32.totalorder %s819_s15, %s813_s26 }
 0x126   : > { %p816_p5 = pneg %p815_p3  ;;  %p822_p9 = por %p821_p7, %p820_p6 }
 0x128   : > { %p823_p10 = pnand %p822_p9, %p816_p5 }
 0x12a   : > { %826 = shalt.err (!%p823_p10)
}
 0x12b   : > { %s827_s18 = scalar_lea.hbm %s1108_s29, %s1098_s21  ;;  %s831_s8 = scalar_lea.hbm %s1162_s3, 1024 }
 0x12c   : > { %p828_p11 = scmp.ne.s32.totalorder %s1108_s29, %s827_s18  ;;  %p832_p0 = scmp.lt.u32.totalorder %s1108_s29, %s1162_s3 }
 0x12d   : > { %p833_p1 = scmp.lt.u32.totalorder %s831_s8, %s827_s18  ;;  %p835_p3 = scmp.lt.u32.totalorder %s827_s18, %s1108_s29 }
 0x12e   : > { %p829_p12 = pnand %p828_p11, %p672_p2 }
 0x12f   : > { %p834_p4 = por %p833_p1, %p832_p0 }
 0x130   : > { %p830_p13 = pneg %p829_p12 }
 0x131   : > { %p836_p5 = por %p835_p3, %p834_p4 }
 0x133   : > { %p837_p6 = pnand %p836_p5, %p830_p13 }
 0x135   : > { %840 = shalt.err (!%p837_p6)
}
 0x136   : > { %s906_s19 = smov 128   ;;  %s907_s23 = smov 8  }
 0x137   : > { %570 = dma.vmem_to_hbm [thread:$0]  (%p672_p2), %s1110_s27, %s1098_s21, %s1108_s29, %s1093_s11, %s906_s19, %s906_s19, %s907_s23  }
 0x138 PF: > { %p695_p7 = scmp.ge.s32.totalorder %s895_s17, 2  ;;  %s579_s5 = sand.u32 1, %s875_s12  }
 0x139   : > { %s580_s22 = scalar_lea.sflag [#allocation5], %s579_s5 }
 0x13a   : > { %p692_p9 = pnand %p695_p7, %p975_p8 }
 0x13c   : > { %870 = dma.done.wait (!%p692_p9), %s580_s22, 640  }
 0x13d   : > { %872 = vsyncadd (!%p692_p9), %s580_s22, 4294966656  ;;  %s16_s17 = sadd.s32 1, %s895_s17   ;;  %s1166_s12 = smov %s879_s13 }
 0x13e   : > { %p13_p10 = scmp.ge.s32.totalorder %s16_s17, 4   ;;  %s1167_s13 = smov %s883_s14 }
 0x13f   : > { %s1168_s14 = smov %s981_s25  ;;  %s1169_s15 = smov %s891_s16 }
 0x140   : > { %s1170_s16 = smov %s1172_s20  ;;  %15 = sbr.rel (!%p13_p10) target bundleno = 4 (0x4), region = 88 }
 0x147   :  { %585 = vsyncpa [#allocation5], 1 }
 0x148   :  { %587 = vsyncpa [#allocation5 + $0x1], 1 }
 0x149   :  { %588 = vsyncmov [#allocation3] }
 0x14c   :  { %s589_s24 = vpop.sfrf %588 }
 0x14d   :  { %p678_p8 = scmp.ne.s32.totalorder %s589_s24, 0 }
 0x14f   :  { %593 = shalt.err (%p678_p8)  }

</bundles_post_ra>
